<compile_context>
chip_gen: v5e
topology: v5e:2x2
jax: 0.10.0
libtpu: 0.0.40
codegen_flags: <defaults>
</compile_context>

<pallas_src>
import functools

import jax
import jax.numpy as jnp
from jax.experimental import pallas as pl
from jax.experimental.pallas import tpu as pltpu


def _round_up(x, m):
    return ((x + m - 1) // m) * m


# ---------------------------------------------------------------------------
# Generation-aware budgets (v7x: 64 MiB VMEM/TC, v5e/v6e: 128 MiB).
# ---------------------------------------------------------------------------
def _budgets():
    try:
        cap = int(pltpu.get_tpu_info().vmem_capacity_bytes)
    except Exception:
        cap = None
    if cap is not None and cap <= 64 * 1024 * 1024:          # v7x-class TC
        return dict(vmem_limit=40 << 20, x_tile=6 << 20,
                    resident_weight=20 << 20, w_chunk=4 << 20)
    if cap is None:                                          # unknown: safe mid
        return dict(vmem_limit=None, x_tile=8 << 20,
                    resident_weight=24 << 20, w_chunk=6 << 20)
    return dict(vmem_limit=80 << 20, x_tile=12 << 20,        # v5e / v6e
                resident_weight=44 << 20, w_chunk=8 << 20)


# ---------------------------------------------------------------------------
# Tile selection
# ---------------------------------------------------------------------------
def _pick_batch_tile(B):
    if B <= 8:
        return B
    if B <= 255:
        # >=2 blocks on the parallel batch axis so both v7x TCs get work.
        return min(_round_up(pl.cdiv(B, 2), 8), 128)
    return 128


def _pick_token_tile(n_real, tb, d, itemsize, budget_bytes):
    """Token tile sized so one x tile fits the budget (x2 double buffering).

    Floor of 8 keeps the sublane-tiled dim a multiple of 8 (may slightly
    exceed the budget for very large TB*D; that is intentional).
    """
    per_token = max(1, tb * d * itemsize)
    tn = budget_bytes // per_token
    if tn >= n_real:
        return n_real
    tn = max(8, (tn // 8) * 8)
    return min(tn, n_real)


def _pick_class_tile(c_pad, d_in, budget_bytes):
    tc = budget_bytes // max(1, d_in * 4)
    tc = max(128, (tc // 128) * 128)
    return min(tc, c_pad)


def _resident_spec(shape):
    """Whole-array block, constant index_map, single-buffered weight/bias."""
    index_map = lambda *_: (0,) * len(shape)
    try:
        return pl.BlockSpec(shape, index_map, pipeline_mode=pl.Buffered(1))
    except TypeError:  # older jax without pipeline_mode on BlockSpec
        return pl.BlockSpec(shape, index_map)


# ---------------------------------------------------------------------------
# Kernels
# ---------------------------------------------------------------------------
def _pool_accumulate(x_ref, acc_ref, *, tn, n_real, mask_last):
    """acc += sum over the token axis of the current (TB, TN, D) tile."""
    n = pl.program_id(1)

    @pl.when(n == 0)
    def _():
        acc_ref[...] = jnp.zeros_like(acc_ref)

    if mask_last:
        last = pl.num_programs(1) - 1

        @pl.when(n != last)
        def _():
            acc_ref[...] += jnp.sum(x_ref[...].astype(jnp.float32), axis=1)

        @pl.when(n == last)
        def _():
            x = x_ref[...].astype(jnp.float32)
            tok = n * tn + jax.lax.broadcasted_iota(jnp.int32, x.shape, 1)
            acc_ref[...] += jnp.sum(jnp.where(tok < n_real, x, 0.0), axis=1)
    else:
        acc_ref[...] += jnp.sum(x_ref[...].astype(jnp.float32), axis=1)


def _fused_mlp_kernel(x_ref, w1_ref, b1_ref, w2_ref, b2_ref, o_ref, acc_ref,
                      *, inv_n, tn, n_real, mask_last):
    """Mean-pool (streamed) then Linear(D,R) -> Tanh -> Linear(R,C_pad)."""
    _pool_accumulate(x_ref, acc_ref, tn=tn, n_real=n_real, mask_last=mask_last)

    @pl.when(pl.program_id(1) == pl.num_programs(1) - 1)
    def _():
        pooled = acc_ref[...] * inv_n                                # (TB, D)
        h = jnp.tanh(jnp.dot(pooled, w1_ref[...],
                             preferred_element_type=jnp.float32) + b1_ref[...])
        o_ref[...] = (jnp.dot(h, w2_ref[...],
                              preferred_element_type=jnp.float32)
                      + b2_ref[...]).astype(o_ref.dtype)


def _fused_linear_kernel(x_ref, w_ref, b_ref, o_ref, acc_ref,
                         *, inv_n, tn, n_real, mask_last):
    """Mean-pool (streamed) then Linear(D, C_pad)."""
    _pool_accumulate(x_ref, acc_ref, tn=tn, n_real=n_real, mask_last=mask_last)

    @pl.when(pl.program_id(1) == pl.num_programs(1) - 1)
    def _():
        pooled = acc_ref[...] * inv_n
        o_ref[...] = (jnp.dot(pooled, w_ref[...],
                              preferred_element_type=jnp.float32)
                      + b_ref[...]).astype(o_ref.dtype)


def _mean_pool_kernel(x_ref, o_ref, *, inv_n, tn, n_real, mask_last):
    """Phase-1 of the class-tiled path: mean over tokens -> (TB, D) f32.

    The f32 output block has a constant index along the token axis, so it
    stays VMEM-resident and is used directly as the accumulator.
    """
    _pool_accumulate(x_ref, o_ref, tn=tn, n_real=n_real, mask_last=mask_last)

    @pl.when(pl.program_id(1) == pl.num_programs(1) - 1)
    def _():
        o_ref[...] *= inv_n


def _head_mlp_kernel(p_ref, w1_ref, b1_ref, w2_ref, b2_ref, o_ref):
    h = jnp.tanh(jnp.dot(p_ref[...].astype(jnp.float32), w1_ref[...],
                         preferred_element_type=jnp.float32) + b1_ref[...])
    o_ref[...] = (jnp.dot(h, w2_ref[...], preferred_element_type=jnp.float32)
                  + b2_ref[...]).astype(o_ref.dtype)


def _head_linear_kernel(p_ref, w_ref, b_ref, o_ref):
    o_ref[...] = (jnp.dot(p_ref[...].astype(jnp.float32), w_ref[...],
                          preferred_element_type=jnp.float32)
                  + b_ref[...]).astype(o_ref.dtype)


# ---------------------------------------------------------------------------
# pallas_call wrappers
# ---------------------------------------------------------------------------
def _fused_call(x, p, mlp, c_pad, budgets, token_tile):
    B, N, D = x.shape
    TB = _pick_batch_tile(B)
    nb = pl.cdiv(B, TB)

    if mlp:
        R = p["w1"].shape[1]
        weight_bytes = 4 * (D * R + R + R * c_pad + c_pad)
    else:
        weight_bytes = 4 * (D * c_pad + c_pad)

    vmem_limit = budgets["vmem_limit"]
    vmem_for_calc = vmem_limit if vmem_limit is not None else (32 << 20)
    # Single-buffered weights + double-buffered output block + f32 accumulator.
    overhead = weight_bytes + 2 * TB * c_pad * 4 + TB * D * 4 + (1 << 20)
    x_budget = max(1 << 20,
                   min(budgets["x_tile"], (vmem_for_calc - overhead) // 2))
    TN = token_tile if token_tile is not None else _pick_token_tile(
        N, TB, D, x.dtype.itemsize, x_budget)
    nn = pl.cdiv(N, TN)
    mask_last = (N % TN) != 0
    inv_n = 1.0 / float(N)

    x_spec = pl.BlockSpec((TB, TN, D), lambda b, n: (b, n, 0))
    out_spec = pl.BlockSpec((TB, c_pad), lambda b, n: (b, 0))
    scratch = [pltpu.VMEM((TB, D), jnp.float32)]
    compiler_params = pltpu.CompilerParams(
        dimension_semantics=("parallel", "arbitrary"),
        vmem_limit_bytes=vmem_limit)
    x_bytes = B * N * D * x.dtype.itemsize

    if mlp:
        kernel = functools.partial(_fused_mlp_kernel, inv_n=inv_n, tn=TN,
                                   n_real=N, mask_last=mask_last)
        cost = pl.CostEstimate(
            flops=2 * B * (D * R + R * c_pad) + B * N * D,
            transcendentals=B * R,
            bytes_accessed=x_bytes + weight_bytes + B * c_pad * 4)
        return pl.pallas_call(
            kernel,
            out_shape=jax.ShapeDtypeStruct((B, c_pad), jnp.float32),
            grid=(nb, nn),
            in_specs=[x_spec,
                      _resident_spec((D, R)),
                      _resident_spec((1, R)),
                      _resident_spec((R, c_pad)),
                      _resident_spec((1, c_pad))],
            out_specs=out_spec,
            scratch_shapes=scratch,
            compiler_params=compiler_params,
            cost_estimate=cost,
        )(x, p["w1"], p["b1"].reshape(1, -1), p["w2"], p["b2"].reshape(1, -1))

    kernel = functools.partial(_fused_linear_kernel, inv_n=inv_n, tn=TN,
                               n_real=N, mask_last=mask_last)
    cost = pl.CostEstimate(
        flops=2 * B * D * c_pad + B * N * D,
        transcendentals=0,
        bytes_accessed=x_bytes + weight_bytes + B * c_pad * 4)
    return pl.pallas_call(
        kernel,
        out_shape=jax.ShapeDtypeStruct((B, c_pad), jnp.float32),
        grid=(nb, nn),
        in_specs=[x_spec,
                  _resident_spec((D, c_pad)),
                  _resident_spec((1, c_pad))],
        out_specs=out_spec,
        scratch_shapes=scratch,
        compiler_params=compiler_params,
        cost_estimate=cost,
    )(x, p["w"], p["b"].reshape(1, -1))


def _pool_call(x, budgets, token_tile):
    """Mean over tokens -> (B, D) f32 (phase-1 of the class-tiled path)."""
    B, N, D = x.shape
    TB = _pick_batch_tile(B)
    nb = pl.cdiv(B, TB)

    vmem_limit = budgets["vmem_limit"]
    vmem_for_calc = vmem_limit if vmem_limit is not None else (32 << 20)
    overhead = 2 * TB * D * 4 + (1 << 20)
    x_budget = max(1 << 20,
                   min(budgets["x_tile"], (vmem_for_calc - overhead) // 2))
    TN = token_tile if token_tile is not None else _pick_token_tile(
        N, TB, D, x.dtype.itemsize, x_budget)
    nn = pl.cdiv(N, TN)
    mask_last = (N % TN) != 0

    kernel = functools.partial(_mean_pool_kernel, inv_n=1.0 / float(N), tn=TN,
                               n_real=N, mask_last=mask_last)
    cost = pl.CostEstimate(
        flops=B * N * D, transcendentals=0,
        bytes_accessed=B * N * D * x.dtype.itemsize + B * D * 4)
    return pl.pallas_call(
        kernel,
        out_shape=jax.ShapeDtypeStruct((B, D), jnp.float32),
        grid=(nb, nn),
        in_specs=[pl.BlockSpec((TB, TN, D), lambda b, n: (b, n, 0))],
        out_specs=pl.BlockSpec((TB, D), lambda b, n: (b, 0)),
        compiler_params=pltpu.CompilerParams(
            dimension_semantics=("parallel", "arbitrary"),
            vmem_limit_bytes=vmem_limit),
        cost_estimate=cost,
    )(x)


def _head_call(pooled, p, mlp, c_pad, budgets, class_tile):
    """Head over a pooled (B, D) tensor, streaming the final weight in
    lane-dense class chunks (classes outermost -> each chunk DMA'd once)."""
    B, D = pooled.shape
    TB = _pick_batch_tile(B)
    nb = pl.cdiv(B, TB)
    d_in = p["w1"].shape[1] if mlp else D
    TC = class_tile if class_tile is not None else _pick_class_tile(
        c_pad, d_in, budgets["w_chunk"])
    nc = pl.cdiv(c_pad, TC)

    pooled_spec = pl.BlockSpec((TB, D), lambda c, b: (b, 0))
    out_spec = pl.BlockSpec((TB, TC), lambda c, b: (b, c))
    compiler_params = pltpu.CompilerParams(
        dimension_semantics=("parallel", "parallel"),
        vmem_limit_bytes=budgets["vmem_limit"])
    p_bytes = B * D * pooled.dtype.itemsize

    if mlp:
        R = p["w1"].shape[1]
        cost = pl.CostEstimate(
            flops=2 * B * (nc * D * R + R * c_pad),
            transcendentals=B * R * nc,
            bytes_accessed=4 * (D * R + R + R * c_pad + c_pad)
            + nc * p_bytes + B * c_pad * 4)
        return pl.pallas_call(
            _head_mlp_kernel,
            out_shape=jax.ShapeDtypeStruct((B, c_pad), jnp.float32),
            grid=(nc, nb),
            in_specs=[pooled_spec,
                      _resident_spec((D, R)),
                      _resident_spec((1, R)),
                      pl.BlockSpec((R, TC), lambda c, b: (0, c)),
                      pl.BlockSpec((1, TC), lambda c, b: (0, c))],
            out_specs=out_spec,
            compiler_params=compiler_params,
            cost_estimate=cost,
        )(pooled, p["w1"], p["b1"].reshape(1, -1), p["w2"],
          p["b2"].reshape(1, -1))

    cost = pl.CostEstimate(
        flops=2 * B * D * c_pad, transcendentals=0,
        bytes_accessed=4 * (D * c_pad + c_pad) + nc * p_bytes + B * c_pad * 4)
    return pl.pallas_call(
        _head_linear_kernel,
        out_shape=jax.ShapeDtypeStruct((B, c_pad), jnp.float32),
        grid=(nc, nb),
        in_specs=[pooled_spec,
                  pl.BlockSpec((D, TC), lambda c, b: (0, c)),
                  pl.BlockSpec((1, TC), lambda c, b: (0, c))],
        out_specs=out_spec,
        compiler_params=compiler_params,
        cost_estimate=cost,
    )(pooled, p["w"], p["b"].reshape(1, -1))


# ---------------------------------------------------------------------------
# Parameter init (mirrors nn.Linear default + OutputLayer._init_weights)
# ---------------------------------------------------------------------------
def _linear_init(key, fan_in, fan_out):
    """PyTorch nn.Linear default: U(-1/sqrt(fan_in), 1/sqrt(fan_in))."""
    kw, kb = jax.random.split(key)
    bound = 1.0 / jnp.sqrt(jnp.float32(fan_in))
    # stored as (in_features, out_features) == W.T of PyTorch
    w = jax.random.uniform(kw, (fan_in, fan_out), jnp.float32, -bound, bound)
    b = jax.random.uniform(kb, (fan_out,), jnp.float32, -bound, bound)
    return w, b


def init_output_layer(key, embedding_dim, num_classes=1000,
                      representation_size=None):
    if representation_size:
        k1, _ = jax.random.split(key)
        w1, b1 = _linear_init(k1, embedding_dim, representation_size)
        # final Linear has weight.shape[0] == num_classes -> zeroed
        w2 = jnp.zeros((representation_size, num_classes), jnp.float32)
        b2 = jnp.zeros((num_classes,), jnp.float32)
        return dict(w1=w1, b1=b1, w2=w2, b2=b2)
    w = jnp.zeros((embedding_dim, num_classes), jnp.float32)
    b = jnp.zeros((num_classes,), jnp.float32)
    return dict(w=w, b=b)


# ---------------------------------------------------------------------------
# Top-level wrapper
# ---------------------------------------------------------------------------
def output_layer(x, params, *, cls_head=False, token_tile=None,
                 class_tile=None, force_class_tiled=False):
    """x: (B, N, D) -> (B, num_classes) float32."""
    B, N, D = x.shape
    budgets = _budgets()
    mlp = "w1" in params
    if mlp:
        R = params["w1"].shape[1]
        C = params["w2"].shape[1]
    else:
        R = None
        C = params["w"].shape[1]
    C_pad = _round_up(C, 128)          # lane-dense output stores

    # Pad the final projection to the lane-dense class count.
    p = dict(params)
    if C_pad != C:
        if mlp:
            p["w2"] = jnp.pad(params["w2"], ((0, 0), (0, C_pad - C)))
            p["b2"] = jnp.pad(params["b2"], ((0, C_pad - C),))
        else:
            p["w"] = jnp.pad(params["w"], ((0, 0), (0, C_pad - C)))
            p["b"] = jnp.pad(params["b"], ((0, C_pad - C),))

    if mlp:
        weight_bytes = 4 * (D * R + R + R * C_pad + C_pad)
    else:
        weight_bytes = 4 * (D * C_pad + C_pad)
    use_class_tiled = (force_class_tiled
                       or weight_bytes > budgets["resident_weight"])

    if cls_head:
        # Only the CLS token leaves HBM; the head kernel tiles classes.
        # TODO(synk): express the token-0 slice via a squeezed token dim in
        # the BlockSpec to drop this (small) wrapper-side gather.
        pooled = x[:, 0, :]
        out = _head_call(pooled, p, mlp, C_pad, budgets, class_tile)
    elif use_class_tiled:
        pooled = _pool_call(x, budgets, token_tile)
        out = _head_call(pooled, p, mlp, C_pad, budgets, class_tile)
    else:
        out = _fused_call(x, p, mlp, C_pad, budgets, token_tile)

    return out[:, :C] if C_pad != C else out


# Pure-JAX reference for verification
def output_layer_ref(x, params, *, cls_head=False):
    pooled = x[:, 0, :] if cls_head else jnp.mean(x, axis=1)
    if "w1" in params:
        h = jnp.tanh(pooled @ params["w1"] + params["b1"])
        return h @ params["w2"] + params["b2"]
    return pooled @ params["w"] + params["b"]


if __name__ == "__main__":
    # Force f32 matmuls in the XLA reference so it matches the kernel's
    # preferred_element_type=f32 MXU accumulation.
    jax.config.update("jax_default_matmul_precision", "highest")

    key = jax.random.PRNGKey(0)
    kx, kx2, kp1, kp2, kr = jax.random.split(key, 5)

    # Small synthetic shapes consistent with the module.
    B, N, D = 2, 8, 32
    R, C = 32, 128   # representation_size=32, num_classes=128

    x = jax.random.normal(kx, (B, N, D), jnp.float32)

    # --- Module-faithful init (final Linear zeroed by _init_weights) --------
    params_mlp = init_output_layer(kp1, D, num_classes=C, representation_size=R)
    out1 = jax.block_until_ready(output_layer(x, params_mlp, cls_head=False))
    ref1 = output_layer_ref(x, params_mlp, cls_head=False)
    assert out1.shape == (B, C)
    assert jnp.allclose(out1, ref1, atol=1e-4), "mismatch (mlp head, mean pool)"

    params_lin = init_output_layer(kp2, D, num_classes=C, representation_size=None)
    out2 = jax.block_until_ready(output_layer(x, params_lin, cls_head=True))
    ref2 = output_layer_ref(x, params_lin, cls_head=True)
    assert out2.shape == (B, C)
    assert jnp.allclose(out2, ref2, atol=1e-4), "mismatch (linear head, cls)"

    # --- Randomized weights: exercises the full compute path ----------------
    k1, k2, k3, k4, k5, k6 = jax.random.split(kr, 6)
    params_rand = dict(
        w1=0.1 * jax.random.normal(k1, (D, R), jnp.float32),
        b1=0.1 * jax.random.normal(k2, (R,), jnp.float32),
        w2=0.1 * jax.random.normal(k3, (R, C), jnp.float32),
        b2=0.1 * jax.random.normal(k4, (C,), jnp.float32),
    )
    out3 = jax.block_until_ready(output_layer(x, params_rand, cls_head=False))
    ref3 = output_layer_ref(x, params_rand, cls_head=False)
    assert jnp.allclose(out3, ref3, atol=1e-4, rtol=1e-4), "mismatch (rand mlp, mean)"

    out4 = jax.block_until_ready(output_layer(x, params_rand, cls_head=True))
    ref4 = output_layer_ref(x, params_rand, cls_head=True)
    assert jnp.allclose(out4, ref4, atol=1e-4, rtol=1e-4), "mismatch (rand mlp, cls)"

    # --- Ragged token grid (masked last block only) + padded class dim ------
    N2, C2 = 20, 100                              # C2=100 -> padded to 128
    x2 = jax.random.normal(kx2, (B, N2, D), jnp.float32)
    params_lin_rand = dict(
        w=0.1 * jax.random.normal(k5, (D, C2), jnp.float32),
        b=0.1 * jax.random.normal(k6, (C2,), jnp.float32),
    )
    out5 = jax.block_until_ready(
        output_layer(x2, params_lin_rand, cls_head=False, token_tile=8))
    ref5 = output_layer_ref(x2, params_lin_rand, cls_head=False)
    assert out5.shape == (B, C2)
    assert jnp.allclose(out5, ref5, atol=1e-4, rtol=1e-4), "mismatch (ragged N)"

    # --- Class-tiled fallback: pool kernel + streamed final-weight chunks ---
    C3 = 256
    params_big_lin = dict(
        w=0.1 * jax.random.normal(k5, (D, C3), jnp.float32),
        b=0.1 * jax.random.normal(k6, (C3,), jnp.float32),
    )
    out6 = jax.block_until_ready(
        output_layer(x2, params_big_lin, cls_head=False, token_tile=8,
                     force_class_tiled=True, class_tile=128))
    ref6 = output_layer_ref(x2, params_big_lin, cls_head=False)
    assert out6.shape == (B, C3)
    assert jnp.allclose(out6, ref6, atol=1e-4, rtol=1e-4), "mismatch (class-tiled lin)"

    params_big_mlp = dict(
        w1=params_rand["w1"], b1=params_rand["b1"],
        w2=0.1 * jax.random.normal(k3, (R, C3), jnp.float32),
        b2=0.1 * jax.random.normal(k4, (C3,), jnp.float32),
    )
    out7 = jax.block_until_ready(
        output_layer(x, params_big_mlp, cls_head=False,
                     force_class_tiled=True, class_tile=128))
    ref7 = output_layer_ref(x, params_big_mlp, cls_head=False)
    assert jnp.allclose(out7, ref7, atol=1e-4, rtol=1e-4), "mismatch (class-tiled mlp)"

    print("KERNEL_OK")
</pallas_src>

<mosaic_0001>
module attributes {stable_mosaic.version = 11 : i64} {
  func.func @_fused_mlp_kernel(%arg0: i32, %arg1: i32, %arg2: memref<2x8x32xf32, #tpu.memory_space<vmem>>, %arg3: memref<32x32xf32, #tpu.memory_space<vmem>>, %arg4: memref<1x32xf32, #tpu.memory_space<vmem>>, %arg5: memref<32x128xf32, #tpu.memory_space<vmem>>, %arg6: memref<1x128xf32, #tpu.memory_space<vmem>>, %arg7: memref<2x128xf32, #tpu.memory_space<vmem>>, %arg8: memref<2x32xf32, #tpu.memory_space<vmem>>) attributes {dimension_semantics = [#tpu.dimension_semantics<parallel>, #tpu.dimension_semantics<arbitrary>], iteration_bounds = array<i64: 1, 1>, scalar_prefetch = 0 : i64, scratch_operands = 1 : i64, tpu.core_type = #tpu.core_type<tc>, window_params = [{transform_indices = @transform_0, window_bounds = array<i64: 2, 8, 32>}, {pipeline_mode = #tpu.pipeline_mode<synchronous>, transform_indices = @transform_1, window_bounds = array<i64: 32, 32>}, {pipeline_mode = #tpu.pipeline_mode<synchronous>, transform_indices = @transform_2, window_bounds = array<i64: 1, 32>}, {pipeline_mode = #tpu.pipeline_mode<synchronous>, transform_indices = @transform_3, window_bounds = array<i64: 32, 128>}, {pipeline_mode = #tpu.pipeline_mode<synchronous>, transform_indices = @transform_4, window_bounds = array<i64: 1, 128>}, {transform_indices = @transform_5, window_bounds = array<i64: 2, 128>}]} {
    %c0_i32 = arith.constant 0 : i32
    %0 = arith.cmpi eq, %arg1, %c0_i32 : i32
    %1 = arith.extui %0 : i1 to i32
    %c0_i32_0 = arith.constant 0 : i32
    %2 = arith.cmpi ne, %1, %c0_i32_0 : i32
    scf.if %2 {
      %cst_9 = arith.constant 0.000000e+00 : f32
      %11 = vector.broadcast %cst_9 : f32 to vector<2x32xf32>
      %c0_10 = arith.constant 0 : index
      %c0_11 = arith.constant 0 : index
      %12 = vector.load %arg8[%c0_10, %c0_11] : memref<2x32xf32, #tpu.memory_space<vmem>>, vector<2x32xf32>
      tpu.vector_store %arg8[%c0_10, %c0_11], %11 {strides = array<i32>} : memref<2x32xf32, #tpu.memory_space<vmem>>, vector<2x32xf32>,
    } else {
    }
    %c0 = arith.constant 0 : index
    %c0_1 = arith.constant 0 : index
    %3 = vector.load %arg8[%c0, %c0_1] : memref<2x32xf32, #tpu.memory_space<vmem>>, vector<2x32xf32>
    %c0_2 = arith.constant 0 : index
    %c0_3 = arith.constant 0 : index
    %c0_4 = arith.constant 0 : index
    %4 = vector.load %arg2[%c0_2, %c0_3, %c0_4] : memref<2x8x32xf32, #tpu.memory_space<vmem>>, vector<2x8x32xf32>
    %cst = arith.constant dense<0.000000e+00> : vector<2x32xf32>
    %5 = vector.multi_reduction <add>, %4, %cst [1] : vector<2x8x32xf32> to vector<2x32xf32>
    %6 = arith.addf %3, %5 : vector<2x32xf32>
    %c0_5 = arith.constant 0 : index
    %c0_6 = arith.constant 0 : index
    %7 = vector.load %arg8[%c0_5, %c0_6] : memref<2x32xf32, #tpu.memory_space<vmem>>, vector<2x32xf32>
    tpu.vector_store %arg8[%c0_5, %c0_6], %6 {strides = array<i32>} : memref<2x32xf32, #tpu.memory_space<vmem>>, vector<2x32xf32>,
    %c0_i32_7 = arith.constant 0 : i32
    %8 = arith.cmpi eq, %arg1, %c0_i32_7 : i32
    %9 = arith.extui %8 : i1 to i32
    %c0_i32_8 = arith.constant 0 : i32
    %10 = arith.cmpi ne, %9, %c0_i32_8 : i32
    scf.if %10 {
      %c0_9 = arith.constant 0 : index
      %c0_10 = arith.constant 0 : index
      %11 = vector.load %arg8[%c0_9, %c0_10] : memref<2x32xf32, #tpu.memory_space<vmem>>, vector<2x32xf32>
      %cst_11 = arith.constant 1.250000e-01 : f32
      %12 = vector.broadcast %cst_11 : f32 to vector<2x32xf32>
      %13 = arith.mulf %11, %12 : vector<2x32xf32>
      %c0_12 = arith.constant 0 : index
      %c0_13 = arith.constant 0 : index
      %14 = vector.load %arg3[%c0_12, %c0_13] : memref<32x32xf32, #tpu.memory_space<vmem>>, vector<32x32xf32>
      %cst_14 = arith.constant dense<0.000000e+00> : vector<2x32xf32>
      %15 = tpu.matmul %13, %14, %cst_14 {dimension_numbers = #tpu.dot_dimension_numbers<[1], [0], [0], [1], [0, 0, 1, 1], [], []>, precision = #tpu.contract_precision<fp32>} : vector<2x32xf32>, vector<32x32xf32>, vector<2x32xf32> -> vector<2x32xf32>
      %c0_15 = arith.constant 0 : index
      %c0_16 = arith.constant 0 : index
      %16 = vector.load %arg4[%c0_15, %c0_16] : memref<1x32xf32, #tpu.memory_space<vmem>>, vector<1x32xf32>
      %17 = vector.broadcast %16 : vector<1x32xf32> to vector<2x32xf32>
      %18 = arith.addf %15, %17 : vector<2x32xf32>
      %19 = math.tanh %18 : vector<2x32xf32>
      %c0_17 = arith.constant 0 : index
      %c0_18 = arith.constant 0 : index
      %20 = vector.load %arg5[%c0_17, %c0_18] : memref<32x128xf32, #tpu.memory_space<vmem>>, vector<32x128xf32>
      %cst_19 = arith.constant dense<0.000000e+00> : vector<2x128xf32>
      %21 = tpu.matmul %19, %20, %cst_19 {dimension_numbers = #tpu.dot_dimension_numbers<[1], [0], [0], [1], [0, 0, 1, 1], [], []>, precision = #tpu.contract_precision<fp32>} : vector<2x32xf32>, vector<32x128xf32>, vector<2x128xf32> -> vector<2x128xf32>
      %c0_20 = arith.constant 0 : index
      %c0_21 = arith.constant 0 : index
      %22 = vector.load %arg6[%c0_20, %c0_21] : memref<1x128xf32, #tpu.memory_space<vmem>>, vector<1x128xf32>
      %23 = vector.broadcast %22 : vector<1x128xf32> to vector<2x128xf32>
      %24 = arith.addf %21, %23 : vector<2x128xf32>
      %c0_22 = arith.constant 0 : index
      %c0_23 = arith.constant 0 : index
      %25 = vector.load %arg7[%c0_22, %c0_23] : memref<2x128xf32, #tpu.memory_space<vmem>>, vector<2x128xf32>
      tpu.vector_store %arg7[%c0_22, %c0_23], %24 {strides = array<i32>} : memref<2x128xf32, #tpu.memory_space<vmem>>, vector<2x128xf32>,
    } else {
    }
    return
  }
  func.func @transform_0(%arg0: i32, %arg1: i32) -> (i32, i32, i32) {
    %c0_i32 = arith.constant 0 : i32
    %c0_i32_0 = arith.constant 0 : i32
    return %arg0, %arg1, %c0_i32 : i32, i32, i32
  }
  func.func @transform_1(%arg0: i32, %arg1: i32) -> (i32, i32) {
    %c0_i32 = arith.constant 0 : i32
    %c0_i32_0 = arith.constant 0 : i32
    %c0_i32_1 = arith.constant 0 : i32
    return %c0_i32, %c0_i32_0 : i32, i32
  }
  func.func @transform_2(%arg0: i32, %arg1: i32) -> (i32, i32) {
    %c0_i32 = arith.constant 0 : i32
    %c0_i32_0 = arith.constant 0 : i32
    %c0_i32_1 = arith.constant 0 : i32
    return %c0_i32, %c0_i32_0 : i32, i32
  }
  func.func @transform_3(%arg0: i32, %arg1: i32) -> (i32, i32) {
    %c0_i32 = arith.constant 0 : i32
    %c0_i32_0 = arith.constant 0 : i32
    %c0_i32_1 = arith.constant 0 : i32
    return %c0_i32, %c0_i32_0 : i32, i32
  }
  func.func @transform_4(%arg0: i32, %arg1: i32) -> (i32, i32) {
    %c0_i32 = arith.constant 0 : i32
    %c0_i32_0 = arith.constant 0 : i32
    %c0_i32_1 = arith.constant 0 : i32
    return %c0_i32, %c0_i32_0 : i32, i32
  }
  func.func @transform_5(%arg0: i32, %arg1: i32) -> (i32, i32) {
    %c0_i32 = arith.constant 0 : i32
    %c0_i32_0 = arith.constant 0 : i32
    return %arg0, %c0_i32 : i32, i32
  }
}

</mosaic_0001>

<bundles_post_ra>
// kernel: tpu_custom_call.1
= control target key start
LH: loop header
LB: loop body
LE: loop exit
PB: predicated region body
PF: predicated region fallthrough
CT: control target
= control target key end

     0   :  { %10 = vsyncpa [#allocation4], 0  ;;  %s691_s0 = inlined_call_operand.hbm [shape: f32[2,8,32], index: 0, kind: input, shape index: {}]   ;;  %s692_s1 = inlined_call_operand.hbm [shape: f32[32,32], index: 1, kind: input, shape index: {}]   ;;  %s693_s2 = inlined_call_operand.vmem [shape: f32[1,32], index: 2, kind: input, shape index: {}]   ;;  %s694_s3 = inlined_call_operand.hbm [shape: f32[32,128], index: 3, kind: input, shape index: {}]   ;;  %s695_s4 = inlined_call_operand.vmem [shape: f32[1,128], index: 4, kind: input, shape index: {}]   ;;  %s696_s5 = inlined_call_operand.hbm [shape: f32[2,128], index: 5, kind: output, shape index: {}]  }
   0x1   :  { %11 = vsyncpa [#allocation7], 0 }
   0x2   :  { %12 = vsyncpa [#allocation5], 0  ;;  %s30_s20 = sshll.u32 %s692_s1, 4  ;;  %s630_s21 = smov [#allocation6]   ;;  %s31_s20 = int_to_ptr.hbm [resolvable:$true] %s30_s20 }
   0x3   :  { %s32_s22 = sshll.u32 %s630_s21, 4  ;;  %s17_s25 = sshll.u32 %s691_s0, 4  ;;  %s33_s22 = int_to_ptr.vmem [resolvable:$true] %s32_s22  ;;  %s18_s25 = int_to_ptr.hbm [resolvable:$true] %s17_s25 }
   0x4   :  { %s631_s26 = smov 128   ;;  %s632_s27 = smov 8  }
   0x5   :  { %38 = dma.hbm_to_vmem [thread:$0]  %s31_s20, 512, %s33_s22, [#allocation7], %s631_s26, %s631_s26, %s632_s27  }
   0x6   :  { %s633_s28 = smov [#allocation3]   ;;  %s45_s7 = sshll.u32 %s694_s3, 4  ;;  %s46_s7 = int_to_ptr.hbm [resolvable:$true] %s45_s7 }
   0x7   :  { %s19_s29 = sshll.u32 %s633_s28, 4  ;;  %s634_s1 = smov [#allocation8]   ;;  %s20_s29 = int_to_ptr.vmem [resolvable:$true] %s19_s29 }
   0x8   :  { %25 = dma.hbm_to_vmem [thread:$0]  %s18_s25, 256, %s20_s29, [#allocation4], %s631_s26, %s631_s26, %s632_s27  }
   0x9   :  { %s47_s8 = sshll.u32 %s634_s1, 4  ;;  %s48_s8 = int_to_ptr.vmem [resolvable:$true] %s47_s8 }
   0xa   :  { %53 = dma.hbm_to_vmem [thread:$0]  %s46_s7, 512, %s48_s8, [#allocation7], %s631_s26, %s631_s26, %s632_s27  }
   0xb   :  { %624 = dma.done.wait [#allocation4], 256  }
   0xc   :  { %625 = vsyncadd [#allocation4], 4294967040 }
   0xd   :  { %626 = dma.done.wait [#allocation7], 1024  }
   0xe   :  { %627 = vsyncadd [#allocation7], 4294966272  ;;  %vm72_vm0 = vcmask 254976   ;;  %v635_v0 = vmov 0.0   ;;  %v108_v1 = vld [vmem:[#allocation6 + $0x18] sm:$0xff]  ;;  %v107_v2 = vld [vmem:[#allocation6 + $0x10] sm:$0xff] }
   0xf   :  { %73 = vst.msk [vmem:[#allocation2] sm:$0x3] %vm72_vm0, %v635_v0  ;;  %v106_v3 = vld [vmem:[#allocation6 + $0x8] sm:$0xff]  ;;  %vm77_vm1 = vcmask 261120   ;;  %v128_v4 = vand.u32 4294901760, %v108_v1  ;;  %v130_v5 = vand.u32 4294901760, %v107_v2 }
  0x10   :  { %v132_v6 = vand.u32 4294901760, %v106_v3  ;;  %v105_v7 = vld [vmem:[#allocation6] sm:$0xff]  ;;  %v75_v9 = vld [vmem:[#allocation3] sm:$0xff]  ;;  %v76_v10 = vld [vmem:[#allocation3 + $0x8] sm:$0xff]  ;;  %vm94_vm2 = vcmask 1041409   ;;  %s636_s10 = smov [#allocation9]  }
  0x11   :  { %v134_v8 = vand.u32 4294901760, %v105_v7  ;;  %v158_v11 = vsub.f32 %v108_v1, %v128_v4  ;;  %129 = vmatpush.msra.mxu0 %v128_v4  ;;  %v164_v12 = vsub.f32 %v107_v2, %v130_v5  ;;  %229 = vmatpush.msra.mxu3 %v128_v4  ;;  %v78_v14 = vsel %vm77_vm1, %v75_v9, 0.0  ;;  %v305_v52 = vld [vmem:[#allocation8 + $0x18] sm:$0xff]  ;;  %v304_v54 = vld [vmem:[#allocation8 + $0x10] sm:$0xff]  ;;  %v303_v57 = vld [vmem:[#allocation8 + $0x8] sm:$0xff]  ;;  %s504_s11 = sshll.u32 %s636_s10, 4  ;;  %s505_s11 = int_to_ptr.vmem [resolvable:$true] %s504_s11 }
  0x12   :  { %v170_v13 = vsub.f32 %v106_v3, %v132_v6  ;;  %v79_v16 = vrot.slane %v78_v14, 4  ;;  %v85_v17 = vsel %vm77_vm1, %v76_v10, 0.0  ;;  %v325_v53 = vand.u32 4294901760, %v305_v52  ;;  %v302_v61 = vld [vmem:[#allocation8] sm:$0xff]  ;;  %s506_s14 = sshll.u32 %s696_s5, 4  ;;  %s507_s14 = int_to_ptr.hbm [resolvable:$true] %s506_s14 }
  0x13   :  { %v176_v15 = vsub.f32 %v105_v7, %v134_v8  ;;  %200 = vmatpush.msra.mxu2 %v158_v11  ;;  %131 = vmatpush.msra.mxu0 %v130_v5  ;;  %v159_v18 = vand.u32 4294901760, %v158_v11  ;;  %v165_v19 = vand.u32 4294901760, %v164_v12  ;;  %v86_v20 = vrot.slane %v85_v17, 4 }
  0x14   :  { %v171_v21 = vand.u32 4294901760, %v170_v13  ;;  %231 = vmatpush.msra.mxu3 %v130_v5  ;;  %v80_v22 = vadd.f32 %v79_v16, %v78_v14  ;;  %v355_v55 = vsub.f32 %v305_v52, %v325_v53  ;;  %v327_v56 = vand.u32 4294901760, %v304_v54 }
  0x15   :  { %v177_v23 = vand.u32 4294901760, %v176_v15  ;;  %203 = vmatpush.msra.mxu2 %v164_v12  ;;  %v160_v24 = vsub.f32 %v158_v11, %v159_v18  ;;  %133 = vmatpush.msra.mxu0 %v132_v6  ;;  %v166_v25 = vsub.f32 %v164_v12, %v165_v19  ;;  %v87_v26 = vadd.f32 %v86_v20, %v85_v17  ;;  %v524_v12 = vld [vmem:[%s693_s2] ss:$0 sm:$0xff] }
  0x16   :  { %233 = vmatpush.msra.mxu3 %v132_v6  ;;  %v81_v27 = vrot.slane %v80_v22, 2  ;;  %v172_v28 = vsub.f32 %v170_v13, %v171_v21  ;;  %v74_v40 = vld [vmem:[#allocation2] sm:$0x3]  ;;  %v356_v58 = vand.u32 4294901760, %v355_v55  ;;  %v361_v59 = vsub.f32 %v304_v54, %v327_v56 }
  0x17   :  { %v161_v29 = vand.u32 4294901760, %v160_v24  ;;  %206 = vmatpush.msra.mxu2 %v170_v13  ;;  %v167_v30 = vand.u32 4294901760, %v166_v25  ;;  %v88_v31 = vrot.slane %v87_v26, 2  ;;  %135 = vmatpush.msra.mxu0 %v134_v8  ;;  %v178_v32 = vsub.f32 %v176_v15, %v177_v23 }
  0x18   :  { %v82_v33 = vadd.f32 %v81_v27, %v80_v22  ;;  %235 = vmatpush.msra.mxu3 %v134_v8  ;;  %v173_v35 = vand.u32 4294901760, %v172_v28  ;;  %v329_v60 = vand.u32 4294901760, %v303_v57  ;;  %v357_v62 = vsub.f32 %v355_v55, %v356_v58 }
  0x19   :  { %258 = vmatpush.msrb.mxu0 %v159_v18  ;;  %162 = vmatpush.msra.mxu1 %v161_v29  ;;  %v89_v34 = vadd.f32 %v88_v31, %v87_v26  ;;  %v179_v38 = vand.u32 4294901760, %v178_v32  ;;  %v362_v63 = vand.u32 4294901760, %v361_v59  ;;  %v331_v1 = vand.u32 4294901760, %v302_v61  ;;  %v525_v32 = vld [vmem:[%s695_s4] ss:$0 sm:$0xff] }
  0x1a   :  { %209 = vmatpush.msra.mxu2 %v176_v15  ;;  %v83_v36 = vrot.slane %v82_v33, 1  ;;  %v367_v0 = vsub.f32 %v303_v57, %v329_v60  ;;  %v358_v2 = vand.u32 4294901760, %v357_v62 }
  0x1b   :  { %262 = vmatpush.msrb.mxu0 %v165_v19  ;;  %168 = vmatpush.msra.mxu1 %v167_v30  ;;  %v90_v37 = vrot.slane %v89_v34, 1  ;;  %v363_v3 = vsub.f32 %v361_v59, %v362_v63 }
  0x1c   :  { %v84_v39 = vadd.f32 %v83_v36, %v82_v33  ;;  %326 = vmatpush.msrb.mxu2 %v325_v53  ;;  %359 = vmatpush.msrb.mxu3 %v358_v2 }
  0x1d   :  { %266 = vmatpush.msrb.mxu0 %v171_v21  ;;  %v91_v41 = vadd.f32 %v90_v37, %v89_v34  ;;  %174 = vmatpush.msra.mxu1 %v173_v35 }
  0x1e   :  { %328 = vmatpush.msrb.mxu2 %v327_v56 }
  0x1f   :  { %270 = vmatpush.msrb.mxu0 %v177_v23  ;;  %v95_v42 = vsel %vm94_vm2, %v91_v41, %v84_v39  ;;  %180 = vmatpush.msra.mxu1 %v179_v38 }
  0x20   :  { %v97_v43 = vadd.f32 %v95_v42, %v74_v40  ;;  %330 = vmatpush.msrb.mxu2 %v329_v60 }
  0x21   :  { %289 = vmatpush.msrb.mxu1 %v128_v4  ;;  %v368_v4 = vand.u32 4294901760, %v367_v0 }
  0x22   :  { %99 = vst.msk [vmem:[#allocation2] sm:$0x3] %vm72_vm0, %v97_v43  ;;  %332 = vmatpush.msrb.mxu2 %v331_v1 }
  0x23   :  { %291 = vmatpush.msrb.mxu1 %v130_v5  ;;  %v373_v5 = vsub.f32 %v302_v61, %v331_v1  ;;  %v369_v7 = vsub.f32 %v367_v0, %v368_v4 }
  0x25   :  { %293 = vmatpush.msrb.mxu1 %v132_v6  ;;  %v364_v6 = vand.u32 4294901760, %v363_v3  ;;  %v370_v9 = vand.u32 4294901760, %v369_v7 }
  0x27   :  { %295 = vmatpush.msrb.mxu1 %v134_v8  ;;  %v374_v8 = vand.u32 4294901760, %v373_v5  ;;  %365 = vmatpush.msrb.mxu3 %v364_v6 }
  0x29   :  { %v103_v44 = vld [vmem:[#allocation2] sm:$0x3]  ;;  %v375_v10 = vsub.f32 %v373_v5, %v374_v8  ;;  %371 = vmatpush.msrb.mxu3 %v370_v9 }
  0x2a   :  { %v104_v45 = vmul.f32 0.125, %v103_v44 }
  0x2b   :  { %v376_v11 = vand.u32 4294901760, %v375_v10 }
  0x2c   :  { %v114_v46 = vsel %vm77_vm1, %v104_v45, 0 }
  0x2d   :  { %v136_v47 = vand.u32 4294901760, %v114_v46  ;;  %377 = vmatpush.msrb.mxu3 %v376_v11 }
  0x2f   :  { %v137_v48 = vsub.f32 %v114_v46, %v136_v47  ;;  %182 = vmatmul.f32.vlgmr.msra.gmra.mxu1 %v136_v47 }
  0x30   :  { %426 = vmatpush.msra.mxu1 %v325_v53 }
  0x31   :  { %212 = vmatmul.f32.vlgmr.msra.gmra.mxu2 %v137_v48  ;;  %v138_v49 = vand.u32 4294901760, %v137_v48 }
  0x32   :  { %428 = vmatpush.msra.mxu1 %v327_v56  ;;  %455 = vmatpush.msra.mxu2 %v356_v58 }
  0x33   :  { %v139_v50 = vsub.f32 %v137_v48, %v138_v49  ;;  %239 = vmatmul.f32.vlgmr.msra.gmra.mxu3 %v138_v49 }
  0x34   :  { %430 = vmatpush.msra.mxu1 %v329_v60  ;;  %459 = vmatpush.msra.mxu2 %v362_v63 }
  0x35   :  { %v140_v51 = vand.u32 4294901760, %v139_v50  ;;  %486 = vmatpush.msra.mxu3 %v325_v53 }
  0x36   :  { %432 = vmatpush.msra.mxu1 %v331_v1  ;;  %463 = vmatpush.msra.mxu2 %v368_v4 }
  0x37   :  { %141 = vmatmul.f32.vlgmr.msra.gmra.mxu0 %v140_v51  ;;  %297 = vmatmul.f32.vlgmr.msrb.gmra.mxu1 %v136_v47 }
  0x38   :  { %397 = vmatpush.msra.mxu0 %v355_v55  ;;  %467 = vmatpush.msra.mxu2 %v374_v8 }
  0x39   :  { %488 = vmatpush.msra.mxu3 %v327_v56 }
  0x3a   :  { %400 = vmatpush.msra.mxu0 %v361_v59 }
  0x3b   :  { %490 = vmatpush.msra.mxu3 %v329_v60 }
  0x3c   :  { %403 = vmatpush.msra.mxu0 %v367_v0 }
  0x3d   :  { %492 = vmatpush.msra.mxu3 %v331_v1 }
  0x3e   :  { %406 = vmatpush.msra.mxu0 %v373_v5 }
  0x3f   :  { %272 = vmatmul.f32.vlgmr.msrb.gmra.mxu0 %v136_v47 }
  0xac   :  { %v183_v13 = vpop.f32.mrf.mxu1 }
  0xb4   :  { %v142_v14 = vpop.f32.mrf.mxu0  ;;  %v213_v16 = vpop.f32.mrf.mxu2 }
  0xb5   :  { %v143_v15 = vadd.f32 %v524_v12, %v142_v14  ;;  %v298_v22 = vpop.f32.mrf.mxu1 }
  0xb6   :  { %v240_v18 = vpop.f32.mrf.mxu3 }
  0xb7   :  { %v184_v17 = vadd.f32 %v183_v13, %v143_v15 }
  0xb9   :  { %v214_v19 = vadd.f32 %v213_v16, %v184_v17 }
  0xbb   :  { %v241_v20 = vadd.f32 %v240_v18, %v214_v19 }
  0xbc   :  { %v273_v21 = vpop.f32.mrf.mxu0 }
  0xbd   :  { %v274_v23 = vadd.f32 %v273_v21, %v241_v20 }
  0xbf   :  { %v299_v24 = vadd.f32 %v298_v22, %v274_v23 }
  0xc1   :  { %526 = vtanh.f32 %v299_v24 }
  0xc7   :  { %v527_v25 = vpop.eup %526 }
  0xc8   :  { %v311_v26 = vsel %vm77_vm1, %v527_v25, 0 }
  0xc9   :  { %v333_v27 = vand.u32 4294901760, %v311_v26 }
  0xcb   :  { %379 = vmatmul.f32.vlgmr.msrb.gmra.mxu3 %v333_v27  ;;  %v334_v28 = vsub.f32 %v311_v26, %v333_v27 }
  0xcd   :  { %409 = vmatmul.f32.vlgmr.msra.gmra.mxu0 %v334_v28  ;;  %v335_v29 = vand.u32 4294901760, %v334_v28 }
  0xcf   :  { %436 = vmatmul.f32.vlgmr.msra.gmra.mxu1 %v335_v29  ;;  %v336_v30 = vsub.f32 %v334_v28, %v335_v29 }
  0xd1   :  { %v337_v31 = vand.u32 4294901760, %v336_v30 }
  0xd3   :  { %338 = vmatmul.f32.vlgmr.msrb.gmra.mxu2 %v337_v31  ;;  %494 = vmatmul.f32.vlgmr.msra.gmra.mxu3 %v333_v27 }
  0xdb   :  { %469 = vmatmul.f32.vlgmr.msra.gmra.mxu2 %v333_v27 }
 0x14a   :  { %v410_v37 = vpop.f32.mrf.mxu0 }
 0x14c   :  { %v437_v39 = vpop.f32.mrf.mxu1 }
 0x14e   :  { %v380_v33 = vpop.f32.mrf.mxu3 }
 0x156   :  { %v339_v34 = vpop.f32.mrf.mxu2  ;;  %v495_v43 = vpop.f32.mrf.mxu3 }
 0x157   :  { %v340_v35 = vadd.f32 %v525_v32, %v339_v34 }
 0x159   :  { %v381_v36 = vadd.f32 %v380_v33, %v340_v35 }
 0x15b   :  { %v411_v38 = vadd.f32 %v410_v37, %v381_v36 }
 0x15d   :  { %v438_v40 = vadd.f32 %v437_v39, %v411_v38 }
 0x15e   :  { %v470_v41 = vpop.f32.mrf.mxu2 }
 0x15f   :  { %v471_v42 = vadd.f32 %v470_v41, %v438_v40 }
 0x161   :  { %v496_v44 = vadd.f32 %v495_v43, %v471_v42 }
 0x163   :  { %498 = vst [vmem:[#allocation9] sm:$0x3] %v496_v44 }
 0x164   :  { %509 = dma.vmem_to_hbm [thread:$0]  %s505_s11, 32, %s507_s14, [#allocation5]  }
 0x165   :  { %628 = dma.done.wait [#allocation5], 32  }
 0x166   :  { %629 = vsyncadd [#allocation5], 4294967264 }
 0x167   :  { %514 = vsyncpa [#allocation4], 1 }
 0x168   :  { %515 = vsyncpa [#allocation7], 1 }
 0x169   :  { %516 = vsyncpa [#allocation5], 1 }

</bundles_post_ra>
